<compile_context>
chip_gen: v7x
topology: tpu7x:2x2x1
jax: 0.10.0
libtpu: 0.0.40
codegen_flags: <defaults>
</compile_context>

<pallas_src>
import math

import jax
import jax.numpy as jnp
from jax.experimental import pallas as pl
from jax.experimental.pallas import tpu as pltpu

_INV_SQRT2 = 1.0 / math.sqrt(2.0)


def _bert_intermediate_kernel(x_ref, w_ref, b_ref, o_ref):
    # x_ref: [tm, H] (input dtype)   w_ref: [H, tn] (compute dtype)
    # b_ref: [1, tn] (f32)           o_ref: [tm, tn] (out dtype)
    x = x_ref[...].astype(w_ref.dtype)   # in-kernel operand cast: no extra HBM pass
    y = jnp.dot(x, w_ref[...], preferred_element_type=jnp.float32)
    y = y + b_ref[...].astype(jnp.float32)
    # erf-based GELU, matching torch: x * 0.5 * (1 + erf(x / sqrt(2))).
    # TODO(synk): if bundle dumps show the VALU slot saturating on v6e/v7x,
    # compute this epilogue in bf16; kept f32 here for torch-parity numerics.
    y = y * 0.5 * (1.0 + jax.lax.erf(y * _INV_SQRT2))
    o_ref[...] = y.astype(o_ref.dtype)


def _round_up(x, m):
    return ((x + m - 1) // m) * m


def _vmem_budget_bytes():
    """~75% of this generation's per-core VMEM (96 MiB v5e/v6e, 48 MiB v7x)."""
    try:
        cap = pltpu.get_tpu_info().vmem_capacity_bytes
    except Exception:
        cap = 64 << 20  # conservative fallback: smallest generation (v7x)
    return int(cap) * 3 // 4


def _choose_tiles(M, H, I, x_bytes, w_bytes, out_bytes, budget, tm_align):
    """Pick (tm, tn) so the (double-buffered) working set fits `budget` bytes."""
    tm = M if M <= 512 else 512  # 512 = multiple of 256 (MXU) and of tm_align

    def need(tm_, tn_):
        return (2 * tm_ * H * x_bytes          # streamed activation tiles
                + 2 * H * tn_ * w_bytes        # weight slab (count both buffers)
                + 2 * tn_ * 4                  # bias slab
                + 2 * tm_ * tn_ * out_bytes)   # streamed output tiles

    tn = I                                     # single-pass x whenever it fits
    while need(tm, tn) > budget and tn > 512:
        tn = max(512, _round_up(tn // 2, 128))
    while need(tm, tn) > budget and tm > 4 * tm_align:
        tm = max(tm_align, _round_up(tm // 2, tm_align))
    return tm, tn, need(tm, tn)


def bert_intermediate(hidden_states, weight, bias, *,
                      compute_dtype=jnp.bfloat16, out_dtype=None):
    """hidden_states: [B, S, H]; weight: [H, I] (transposed vs torch nn.Linear);
    bias: [I].  Returns gelu(hidden_states @ weight + bias): [B, S, I]."""
    B, S, H = hidden_states.shape
    Hw, I = weight.shape
    assert Hw == H, (Hw, H)
    if out_dtype is None:
        out_dtype = hidden_states.dtype
    compute_dtype = jnp.dtype(compute_dtype)

    M = B * S
    x_bytes = jnp.dtype(hidden_states.dtype).itemsize
    w_bytes = compute_dtype.itemsize
    out_bytes = jnp.dtype(out_dtype).itemsize

    # bf16 packs two rows per sublane; keep tm a multiple of 16 (32 for 8-bit).
    tm_align = {1: 32, 2: 16}.get(w_bytes, 8)

    budget = _vmem_budget_bytes()
    tm, tn, need = _choose_tiles(M, H, I, x_bytes, w_bytes, out_bytes,
                                 budget, tm_align)
    n_m = pl.cdiv(M, tm)
    n_n = pl.cdiv(I, tn)

    x2d = hidden_states.reshape(M, H)          # free view, no copy
    if n_n > 1 and x2d.dtype != compute_dtype:
        # Multi-pass fallback only: pre-cast once so each re-read streams at
        # the narrow width instead of streaming f32 (and casting) n_n times.
        x2d = x2d.astype(compute_dtype)
        x_bytes = w_bytes
    w = weight.astype(compute_dtype)           # read-once array; cheap one-off cast
    b2d = bias.reshape(1, I).astype(jnp.float32)

    cost = pl.CostEstimate(
        flops=2 * M * H * I,
        transcendentals=M * I,
        bytes_accessed=(n_n * M * H * x_bytes + H * I * w_bytes
                        + M * I * out_bytes + I * 4),
    )

    x_spec_kwargs = {}
    if n_n > 1:
        # With tn < I the per-step x DMA can exceed per-step compute; deepen
        # the x pipeline so the exposed DMA stays hidden.
        x_spec_kwargs["pipeline_mode"] = pl.Buffered(3)

    vmem_limit = int(min(budget, max(32 << 20, need + need // 4 + (2 << 20))))

    out = pl.pallas_call(
        _bert_intermediate_kernel,
        out_shape=jax.ShapeDtypeStruct((M, I), out_dtype),
        grid_spec=pltpu.PrefetchScalarGridSpec(
            num_scalar_prefetch=0,
            # N-tiles outer, M-tiles inner: the weight/bias block index is
            # constant across the inner axis -> fetched once per N tile and
            # kept resident while x / out tiles stream (single pass when
            # tn == I, which is the default whenever VMEM allows).
            grid=(n_n, n_m),
            in_specs=[
                pl.BlockSpec((tm, H), lambda j, i: (i, 0), **x_spec_kwargs),
                pl.BlockSpec((H, tn), lambda j, i: (0, j)),
                pl.BlockSpec((1, tn), lambda j, i: (0, j)),
            ],
            out_specs=pl.BlockSpec((tm, tn), lambda j, i: (i, j)),
        ),
        compiler_params=pltpu.CompilerParams(
            # Both axes are embarrassingly parallel (no reduction axis). In the
            # primary path n_n == 1, so the megacore / v7x core split can only
            # land on the M axis, which is what we want (activations sharded,
            # small weight slab duplicated).
            dimension_semantics=("parallel", "parallel"),
            vmem_limit_bytes=vmem_limit,
        ),
        cost_estimate=cost,
    )(x2d, w, b2d)

    return out.reshape(B, S, I)


def _reference(hidden_states, weight, bias):
    y = jnp.einsum("bsh,hi->bsi",
                   hidden_states.astype(jnp.float32),
                   weight.astype(jnp.float32)) + bias.astype(jnp.float32)
    return y * 0.5 * (1.0 + jax.lax.erf(y * _INV_SQRT2))


if __name__ == "__main__":
    # config: hidden_size=32, intermediate_size=128, hidden_act='gelu'
    batch, seq, hidden, intermediate = 2, 8, 32, 128

    key = jax.random.PRNGKey(0)
    kx, kw, kb = jax.random.split(key, 3)

    hidden_states = jax.random.normal(kx, (batch, seq, hidden), dtype=jnp.float32)
    # Deterministic Linear params (weight stored as [in, out] for the kernel).
    bound = 1.0 / math.sqrt(hidden)
    weight = jax.random.uniform(kw, (hidden, intermediate), jnp.float32, -bound, bound)
    bias = jax.random.uniform(kb, (intermediate,), jnp.float32, -bound, bound)

    ref = _reference(hidden_states, weight, bias)

    # Default fast path: bf16 MXU operands with f32 accumulation + f32 epilogue.
    out = bert_intermediate(hidden_states, weight, bias)
    jax.block_until_ready(out)
    assert out.shape == (batch, seq, intermediate)
    assert jnp.allclose(out, ref, atol=5e-2, rtol=5e-2)

    # Exact torch-parity numerics: f32 operands end-to-end.
    out_f32 = bert_intermediate(hidden_states, weight, bias,
                                compute_dtype=jnp.float32)
    jax.block_until_ready(out_f32)
    assert jnp.allclose(out_f32, ref, atol=1e-5, rtol=1e-5)

    # TODO(synk): the rest of PretrainedBA (PNA graph encoder, attention stack,
    # LayerNorm, dropout, BA MLP head) is orchestration around standard ops and
    # is left to XLA; only this dense Linear+GELU hot path is hand-written.

    print("KERNEL_OK")
</pallas_src>

<mosaic_0001>
module attributes {stable_mosaic.version = 11 : i64} {
  func.func @_bert_intermediate_kernel(%arg0: i32, %arg1: i32, %arg2: memref<16x32xf32, #tpu.memory_space<vmem>>, %arg3: memref<32x128xbf16, #tpu.memory_space<vmem>>, %arg4: memref<1x128xf32, #tpu.memory_space<vmem>>, %arg5: memref<16x128xf32, #tpu.memory_space<vmem>>) attributes {dimension_semantics = [#tpu.dimension_semantics<parallel>, #tpu.dimension_semantics<parallel>], iteration_bounds = array<i64: 1, 1>, scalar_prefetch = 0 : i64, scratch_operands = 0 : i64, tpu.core_type = #tpu.core_type<tc>, window_params = [{transform_indices = @transform_0, window_bounds = array<i64: 16, 32>}, {transform_indices = @transform_1, window_bounds = array<i64: 32, 128>}, {transform_indices = @transform_2, window_bounds = array<i64: 1, 128>}, {transform_indices = @transform_3, window_bounds = array<i64: 16, 128>}]} {
    %c0 = arith.constant 0 : index
    %c0_0 = arith.constant 0 : index
    %0 = vector.load %arg2[%c0, %c0_0] : memref<16x32xf32, #tpu.memory_space<vmem>>, vector<16x32xf32>
    %1 = arith.truncf %0 : vector<16x32xf32> to vector<16x32xbf16>
    %c0_1 = arith.constant 0 : index
    %c0_2 = arith.constant 0 : index
    %2 = vector.load %arg3[%c0_1, %c0_2] : memref<32x128xbf16, #tpu.memory_space<vmem>>, vector<32x128xbf16>
    %cst = arith.constant dense<0.000000e+00> : vector<16x128xf32>
    %3 = tpu.matmul %1, %2, %cst {dimension_numbers = #tpu.dot_dimension_numbers<[1], [0], [0], [1], [0, 0, 1, 1], [], []>} : vector<16x32xbf16>, vector<32x128xbf16>, vector<16x128xf32> -> vector<16x128xf32>
    %c0_3 = arith.constant 0 : index
    %c0_4 = arith.constant 0 : index
    %4 = vector.load %arg4[%c0_3, %c0_4] : memref<1x128xf32, #tpu.memory_space<vmem>>, vector<1x128xf32>
    %5 = vector.broadcast %4 : vector<1x128xf32> to vector<16x128xf32>
    %6 = arith.addf %3, %5 : vector<16x128xf32>
    %cst_5 = arith.constant 5.000000e-01 : f32
    %7 = vector.broadcast %cst_5 : f32 to vector<16x128xf32>
    %8 = arith.mulf %6, %7 : vector<16x128xf32>
    %cst_6 = arith.constant 0.707106769 : f32
    %9 = vector.broadcast %cst_6 : f32 to vector<16x128xf32>
    %10 = arith.mulf %6, %9 : vector<16x128xf32>
    %11 = math.erf %10 : vector<16x128xf32>
    %cst_7 = arith.constant 1.000000e+00 : f32
    %12 = vector.broadcast %cst_7 : f32 to vector<16x128xf32>
    %13 = arith.addf %12, %11 : vector<16x128xf32>
    %14 = arith.mulf %8, %13 : vector<16x128xf32>
    %c0_8 = arith.constant 0 : index
    %c0_9 = arith.constant 0 : index
    %15 = vector.load %arg5[%c0_8, %c0_9] : memref<16x128xf32, #tpu.memory_space<vmem>>, vector<16x128xf32>
    tpu.vector_store %arg5[%c0_8, %c0_9], %14 {strides = array<i32>} : memref<16x128xf32, #tpu.memory_space<vmem>>, vector<16x128xf32>,
    return
  }
  func.func @transform_0(%arg0: i32, %arg1: i32) -> (i32, i32) {
    %c0_i32 = arith.constant 0 : i32
    %c0_i32_0 = arith.constant 0 : i32
    return %arg1, %c0_i32 : i32, i32
  }
  func.func @transform_1(%arg0: i32, %arg1: i32) -> (i32, i32) {
    %c0_i32 = arith.constant 0 : i32
    %c0_i32_0 = arith.constant 0 : i32
    return %c0_i32, %arg0 : i32, i32
  }
  func.func @transform_2(%arg0: i32, %arg1: i32) -> (i32, i32) {
    %c0_i32 = arith.constant 0 : i32
    %c0_i32_0 = arith.constant 0 : i32
    return %c0_i32, %arg0 : i32, i32
  }
  func.func @transform_3(%arg0: i32, %arg1: i32) -> (i32, i32) {
    %c0_i32 = arith.constant 0 : i32
    return %arg1, %arg0 : i32, i32
  }
}

</mosaic_0001>

<bundles_post_ra>
// kernel: tpu_custom_call.1
= control target key start
LH: loop header
LB: loop body
LE: loop exit
PB: predicated region body
PF: predicated region fallthrough
CT: control target
= control target key end

     0   :  { %8 = vsyncpa [#allocation3], 0  ;;  %s321_s0 = inlined_call_operand.hbm [shape: f32[16,32], index: 0, kind: input, shape index: {}]   ;;  %s322_s1 = inlined_call_operand.hbm [shape: bf16[32,128], index: 1, kind: input, shape index: {}]   ;;  %s323_s2 = inlined_call_operand.vmem [shape: f32[1,128], index: 2, kind: input, shape index: {}]   ;;  %s324_s3 = inlined_call_operand.hbm [shape: f32[16,128], index: 3, kind: output, shape index: {}]  }
   0x1   :  { %9 = vsyncpa [#allocation6], 0 }
   0x2   :  { %10 = vsyncpa [#allocation4], 0  ;;  %s247_s12 = smov [#allocation2]   ;;  %s175_s16 = scalar_lea.hbm %s321_s0, 256 }
   0x3   :  { %s16_s13 = sshll.u32 %s247_s12, 4  ;;  %p176_p0 = scmp.ne.s32.totalorder %s321_s0, %s175_s16  ;;  %s17_s13 = int_to_ptr.vmem [resolvable:$true] %s16_s13 }
   0x4   :  { %p179_p1 = scmp.lt.u32.totalorder %s175_s16, %s321_s0 }
   0x6   :  { %p181_p2 = pnand %p179_p1, %p176_p0 }
   0x8   :  { %184 = shalt.err (!%p181_p2)
}
   0x9   :  { %s185_s21 = scalar_lea.vmem %s17_s13, 256  ;;  %p190_p4 = scmp.lt.s32.totalorder %s17_s13, %s17_s13 }
   0xa   :  { %p186_p3 = scmp.ne.s32.totalorder %s17_s13, %s185_s21  ;;  %p191_p5 = scmp.lt.s32.totalorder %s185_s21, %s185_s21 }
   0xc   :  { %p192_p6 = por %p191_p5, %p190_p4 }
   0xe   :  { %p193_p7 = pnand %p192_p6, %p186_p3 }
  0x10   :  { %196 = shalt.err (!%p193_p7)
}
  0x11   :  { %s248_s22 = smov 128   ;;  %s249_s23 = smov 8  }
  0x12   :  { %22 = dma.hbm_to_vmem [thread:$0]  %s321_s0, 256, %s17_s13, [#allocation3], %s248_s22, %s248_s22, %s249_s23  }
  0x13   :  { %s250_s26 = smov [#allocation5]   ;;  %s197_s30 = scalar_lea.hbm %s322_s1, 256 }
  0x14   :  { %s28_s27 = sshll.u32 %s250_s26, 4  ;;  %p198_p8 = scmp.ne.s32.totalorder %s322_s1, %s197_s30  ;;  %s29_s27 = int_to_ptr.vmem [resolvable:$true] %s28_s27 }
  0x15   :  { %p201_p9 = scmp.lt.u32.totalorder %s197_s30, %s322_s1 }
  0x17   :  { %p203_p10 = pnand %p201_p9, %p198_p8 }
  0x19   :  { %206 = shalt.err (!%p203_p10)
}
  0x1a   :  { %s207_s8 = scalar_lea.vmem %s29_s27, 256  ;;  %p212_p12 = scmp.lt.s32.totalorder %s29_s27, %s29_s27 }
  0x1b   :  { %p208_p11 = scmp.ne.s32.totalorder %s29_s27, %s207_s8  ;;  %p213_p13 = scmp.lt.s32.totalorder %s207_s8, %s207_s8 }
  0x1d   :  { %p214_p0 = por %p213_p13, %p212_p12 }
  0x1f   :  { %p215_p1 = pnand %p214_p0, %p208_p11 }
  0x21   :  { %218 = shalt.err (!%p215_p1)
}
  0x22   :  { %s251_s0 = smov 64   ;;  %s252_s9 = smov 4  }
  0x23   :  { %34 = dma.hbm_to_vmem [thread:$0]  %s322_s1, 256, %s29_s27, [#allocation6], %s251_s0, %s251_s0, %s252_s9  }
  0x24   :  { %241 = dma.done.wait [#allocation3], 256  }
  0x25   :  { %242 = vsyncadd [#allocation3], 4294967040 }
  0x26   :  { %243 = dma.done.wait [#allocation6], 256  }
  0x27   :  { %244 = vsyncadd [#allocation6], 4294967040  ;;  %v253_v0 = vmov 0.0   ;;  %vm254_vm0 = vmmov 0   ;;  %v169_v1 = vld [vmem:[#allocation5] sm:$0xff]   ;;  %v170_v2 = vld [vmem:[#allocation5 + $0x8] sm:$0xff]  }
  0x28   :  { %152 = vmatprep.subr.bf16.mxu0 %v253_v0  ;;  %156 = vmatprep.mubr.msk.bf16.mxu0 %vm254_vm0, %v253_v0  ;;  %v44_v3 = vld [vmem:[#allocation2] sm:$0xff]  ;;  %v45_v4 = vld [vmem:[#allocation2 + $0x8] sm:$0xff]  ;;  %vm70_vm1 = vcmask 261120   ;;  %s255_s13 = smov [#allocation7]  }
  0x29   :  { %153 = vmatpush3.bf16.msra.mxu0 %v169_v1  ;;  %v46_v5 = vpack.c.bf16 %v45_v4, %v44_v3  ;;  %v145_v6 = vld [vmem:[%s323_s2] ss:$0 sm:$0xff]  ;;  %s132_s14 = sshll.u32 %s255_s13, 4  ;;  %s133_s14 = int_to_ptr.vmem [resolvable:$true] %s132_s14 }
  0x2a   :  { %154 = vmatprep.subr.bf16.mxu0 %v253_v0  ;;  %s219_s2 = scalar_lea.vmem %s133_s14, 256  ;;  %p224_p3 = scmp.lt.s32.totalorder %s133_s14, %s133_s14 }
  0x2b   :  { %p220_p2 = scmp.ne.s32.totalorder %s133_s14, %s219_s2  ;;  %p225_p4 = scmp.lt.s32.totalorder %s219_s2, %s219_s2 }
  0x2d   :  { %155 = vmatpush3.bf16.msra.mxu0 %v170_v2  ;;  %p226_p5 = por %p225_p4, %p224_p3 }
  0x2f   :  { %p227_p6 = pnand %p226_p5, %p220_p2 }
  0x30   :  { %157 = vmatmul.mubr.msk.bf16.vlgmr.msra.gmra.mrb[0].mxu0 %vm70_vm1, %v46_v5 }
 0x103   :  { %v108_v7 = vpop.f32.mrb[0].mxu0 }
 0x104   :  { %v109_v8 = vadd.f32 %v145_v6, %v108_v7  ;;  %v158_v9 = vpop.f32.mrb[1].mxu0 }
 0x105   :  { %v111_v10 = vpop.f32.mrb[2].mxu0 }
 0x106   :  { %v117_v11 = vmul.f32 0.70710677, %v109_v8  ;;  %v112_v12 = vadd.f32 %v145_v6, %v111_v10  ;;  %v159_v13 = vpop.f32.mrb[3].mxu0  ;;  %v115_v16 = vmul.f32 0.5, %v109_v8 }
 0x108   :  { %171 = verf.f32 %v117_v11  ;;  %v118_v14 = vmul.f32 0.70710677, %v112_v12  ;;  %v116_v20 = vmul.f32 0.5, %v112_v12 }
 0x10a   :  { %173 = verf.f32 %v118_v14 }
 0x112   :  { %v172_v15 = vpop.eup %171 }
 0x113   :  { %v121_v17 = vadd.f32 1.0, %v172_v15 }
 0x114   :  { %v174_v18 = vpop.eup %173 }
 0x115   :  { %v123_v19 = vmul.f32 %v121_v17, %v115_v16  ;;  %v122_v21 = vadd.f32 1.0, %v174_v18 }
 0x117   :  { %125 = vst [vmem:[#allocation7] sm:$0xff] %v123_v19  ;;  %v124_v22 = vmul.f32 %v122_v21, %v116_v20 }
 0x119   :  { %126 = vst [vmem:[#allocation7 + $0x8] sm:$0xff] %v124_v22 }
 0x11a   :  { %230 = shalt.err (!%p227_p6)
}
 0x11b   :  { %s231_s17 = scalar_lea.hbm %s324_s3, 256 }
 0x11c   :  { %p232_p7 = scmp.ne.s32.totalorder %s324_s3, %s231_s17  ;;  %p235_p8 = scmp.lt.u32.totalorder %s231_s17, %s324_s3 }
 0x11e   :  { %p237_p9 = pnand %p235_p8, %p232_p7 }
 0x120   :  { %240 = shalt.err (!%p237_p9)
}
 0x121   :  { %138 = dma.vmem_to_hbm [thread:$0]  %s133_s14, 256, %s324_s3, [#allocation4], %s248_s22, %s248_s22, %s249_s23  }
 0x122   :  { %245 = dma.done.wait [#allocation4], 256  }
 0x123   :  { %246 = vsyncadd [#allocation4], 4294967040 }
 0x124   :  { %142 = vsyncpa [#allocation3], 1 }
 0x125   :  { %143 = vsyncpa [#allocation6], 1 }
 0x126   :  { %144 = vsyncpa [#allocation4], 1 }

</bundles_post_ra>
